<compile_context>
chip_gen: v7x
topology: tpu7x:2x2x1
jax: 0.10.0
libtpu: 0.0.40
codegen_flags: <defaults>
</compile_context>

<pallas_src>
import jax
import jax.numpy as jnp
from jax.experimental import pallas as pl
from jax.experimental.pallas import tpu as pltpu

_TARGET_TILE_BYTES = 2 * 1024 * 1024   # ~2 MiB tiles: good on v5e/v6e/v7x
_VMEM_LIMIT_BYTES = 48 * 1024 * 1024   # explicit scoped limit; safe even on v7x


def _normalize_kernel(scale_ref, bias_ref, x_ref, o_ref):
    # x_ref/o_ref: (Rb, Lb) tile; scale/bias: (Rb, 1) -> row-broadcast on the VPU.
    o_ref[...] = (x_ref[...] * scale_ref[...] + bias_ref[...]).astype(o_ref.dtype)


def _choose_blocks(rows_total, lanes_total, itemsize, target_bytes=_TARGET_TILE_BYTES):
    """Pick (Rb, Lb) so one tile is ~target_bytes and obeys TPU tiling rules."""
    # Sublane granularity: 8 for 4-byte, 16 for 2-byte, 32 for 1-byte dtypes.
    sub = {4: 8, 2: 16, 1: 32}.get(itemsize, 8)

    rows = target_bytes // max(1, lanes_total * itemsize)
    if rows >= rows_total:
        rb = rows_total
    else:
        rb = max(sub, (rows // sub) * sub)
        if rb > rows_total:          # fewer total rows than one sublane group
            rb = rows_total

    lb = lanes_total
    # Only split the lane dim when a full-width row block is still too big and
    # the split is a clean multiple of 128 that divides the full extent
    # (keeps every block lane-dense with no ragged/masked tail).
    if rb * lanes_total * itemsize > target_bytes and lanes_total % 128 == 0:
        want = max(128, (target_bytes // max(1, rb * itemsize * 128)) * 128)
        for cand in range(min(want, lanes_total), 0, -128):
            if lanes_total % cand == 0:
                lb = cand
                break
    return rb, lb


def normalize_by_channel_mean_std(x, mean, std):
    """Pallas TPU implementation of NormalizeByChannelMeanStd.forward (others=None)."""
    N, C, H, W = x.shape
    assert mean.shape == (C,) and std.shape == (C,)

    R, L = N * C, H * W
    itemsize = jnp.dtype(x.dtype).itemsize

    # Tiny per-channel affine params (done once in the wrapper), expanded to
    # per-row (row = n*C + c) so a tile can span many rows/channels at once.
    scale = 1.0 / std.astype(jnp.float32)
    bias = -mean.astype(jnp.float32) * scale
    scale_rows = jnp.broadcast_to(scale[None, :], (N, C)).reshape(R, 1)
    bias_rows = jnp.broadcast_to(bias[None, :], (N, C)).reshape(R, 1)

    x2 = x.reshape(R, L)   # contiguous view of NCHW -> lane-dense last dim

    Rb, Lb = _choose_blocks(R, L, itemsize)
    grid = (pl.cdiv(R, Rb), pl.cdiv(L, Lb))

    out2 = pl.pallas_call(
        _normalize_kernel,
        out_shape=jax.ShapeDtypeStruct((R, L), x.dtype),
        grid=grid,
        in_specs=[
            pl.BlockSpec((Rb, 1), lambda r, l: (r, 0)),    # scale per row
            pl.BlockSpec((Rb, 1), lambda r, l: (r, 0)),    # bias per row
            pl.BlockSpec((Rb, Lb), lambda r, l: (r, l)),   # x tile
        ],
        out_specs=pl.BlockSpec((Rb, Lb), lambda r, l: (r, l)),
        compiler_params=pltpu.CompilerParams(
            dimension_semantics=("parallel", "parallel"),
            vmem_limit_bytes=_VMEM_LIMIT_BYTES,
        ),
    )(scale_rows, bias_rows, x2)

    return out2.reshape(N, C, H, W)


def _reference(x, mean, std):
    return (x - mean[None, :, None, None]) / std[None, :, None, None]


if __name__ == "__main__":
    key = jax.random.PRNGKey(0)
    N, C, H, W = 2, 4, 16, 16

    kx, km, ks = jax.random.split(key, 3)
    x = jax.random.normal(kx, (N, C, H, W), dtype=jnp.float32)
    # Deterministic "buffer" parameters (synthetic, not loaded from checkpoint).
    mean = jax.random.uniform(km, (C,), dtype=jnp.float32, minval=-0.5, maxval=0.5)
    std = jax.random.uniform(ks, (C,), dtype=jnp.float32, minval=0.5, maxval=1.5)

    out = normalize_by_channel_mean_std(x, mean, std)
    out = jax.block_until_ready(out)

    ref = _reference(x, mean, std)
    assert out.shape == ref.shape and out.dtype == ref.dtype
    assert jnp.allclose(out, ref, atol=1e-5, rtol=1e-5), "mismatch vs reference"

    print("KERNEL_OK")
</pallas_src>

<mosaic_0001>
module attributes {stable_mosaic.version = 11 : i64} {
  func.func @_normalize_kernel(%arg0: i32, %arg1: i32, %arg2: memref<8x1xf32, #tpu.memory_space<vmem>>, %arg3: memref<8x1xf32, #tpu.memory_space<vmem>>, %arg4: memref<8x256xf32, #tpu.memory_space<vmem>>, %arg5: memref<8x256xf32, #tpu.memory_space<vmem>>) attributes {dimension_semantics = [#tpu.dimension_semantics<parallel>, #tpu.dimension_semantics<parallel>], iteration_bounds = array<i64: 1, 1>, scalar_prefetch = 0 : i64, scratch_operands = 0 : i64, tpu.core_type = #tpu.core_type<tc>, window_params = [{transform_indices = @transform_0, window_bounds = array<i64: 8, 1>}, {transform_indices = @transform_1, window_bounds = array<i64: 8, 1>}, {transform_indices = @transform_2, window_bounds = array<i64: 8, 256>}, {transform_indices = @transform_3, window_bounds = array<i64: 8, 256>}]} {
    %c0 = arith.constant 0 : index
    %c0_0 = arith.constant 0 : index
    %0 = vector.load %arg4[%c0, %c0_0] : memref<8x256xf32, #tpu.memory_space<vmem>>, vector<8x256xf32>
    %c0_1 = arith.constant 0 : index
    %c0_2 = arith.constant 0 : index
    %1 = vector.load %arg2[%c0_1, %c0_2] : memref<8x1xf32, #tpu.memory_space<vmem>>, vector<8x1xf32>
    %2 = vector.broadcast %1 : vector<8x1xf32> to vector<8x256xf32>
    %3 = arith.mulf %0, %2 : vector<8x256xf32>
    %c0_3 = arith.constant 0 : index
    %c0_4 = arith.constant 0 : index
    %4 = vector.load %arg3[%c0_3, %c0_4] : memref<8x1xf32, #tpu.memory_space<vmem>>, vector<8x1xf32>
    %5 = vector.broadcast %4 : vector<8x1xf32> to vector<8x256xf32>
    %6 = arith.addf %3, %5 : vector<8x256xf32>
    %c0_5 = arith.constant 0 : index
    %c0_6 = arith.constant 0 : index
    %7 = vector.load %arg5[%c0_5, %c0_6] : memref<8x256xf32, #tpu.memory_space<vmem>>, vector<8x256xf32>
    tpu.vector_store %arg5[%c0_5, %c0_6], %6 {strides = array<i32>} : memref<8x256xf32, #tpu.memory_space<vmem>>, vector<8x256xf32>,
    return
  }
  func.func @transform_0(%arg0: i32, %arg1: i32) -> (i32, i32) {
    %c0_i32 = arith.constant 0 : i32
    %c0_i32_0 = arith.constant 0 : i32
    return %arg0, %c0_i32 : i32, i32
  }
  func.func @transform_1(%arg0: i32, %arg1: i32) -> (i32, i32) {
    %c0_i32 = arith.constant 0 : i32
    %c0_i32_0 = arith.constant 0 : i32
    return %arg0, %c0_i32 : i32, i32
  }
  func.func @transform_2(%arg0: i32, %arg1: i32) -> (i32, i32) {
    %c0_i32 = arith.constant 0 : i32
    return %arg0, %arg1 : i32, i32
  }
  func.func @transform_3(%arg0: i32, %arg1: i32) -> (i32, i32) {
    %c0_i32 = arith.constant 0 : i32
    return %arg0, %arg1 : i32, i32
  }
}

</mosaic_0001>

<bundles_post_ra>
// kernel: tpu_custom_call.1
= control target key start
LH: loop header
LB: loop body
LE: loop exit
PB: predicated region body
PF: predicated region fallthrough
CT: control target
= control target key end

     0   :  { %s122_s0 = inlined_call_operand.vmem [shape: f32[8,1], index: 0, kind: input, shape index: {}]   ;;  %s123_s1 = inlined_call_operand.vmem [shape: f32[8,1], index: 1, kind: input, shape index: {}]   ;;  %s124_s2 = inlined_call_operand.vmem [shape: f32[8,256], index: 2, kind: input, shape index: {}]   ;;  %s125_s3 = inlined_call_operand.hbm [shape: f32[8,256], index: 3, kind: output, shape index: {}]  }
   0x1   :  { %v17_v0 = vld [vmem:[%s122_s0] sm:$0xff] }
   0x2   :  { %8 = vsyncpa [#allocation3], 0  ;;  %v76_v1 = vmov 0   ;;  %v25_v2 = vld [vmem:[%s123_s1] sm:$0xff]  ;;  %v16_v5 = vld [vmem:[%s124_s2 + $0x8] sm:$0xff]  ;;  %s77_s20 = smov [#allocation2]  }
   0x3   :  { %51 = vset.pattern.permute.xlu0 %v76_v1  ;;  %v15_v4 = vld [vmem:[%s124_s2] sm:$0xff]  ;;  %s41_s0 = sshll.u32 %s77_s20, 4  ;;  %s42_s0 = int_to_ptr.vmem [resolvable:$true] %s41_s0 }
   0x4   :  { %20 = vperm.xlu0 %51, %v17_v0   ;;  %s52_s1 = scalar_lea.vmem %s42_s0, 256  ;;  %p57_p1 = scmp.lt.s32.totalorder %s42_s0, %s42_s0 }
   0x5   :  { %p53_p0 = scmp.ne.s32.totalorder %s42_s0, %s52_s1  ;;  %p58_p2 = scmp.lt.s32.totalorder %s52_s1, %s52_s1 }
   0x7   :  { %p59_p3 = por %p58_p2, %p57_p1 }
   0x8   :  { %28 = vperm.xlu0 %51, %v25_v2  }
   0x9   :  { %p60_p4 = pnand %p59_p3, %p53_p0 }
  0x83   :  { %v21_v3 = vpop.permute.xlu0 %20 }
  0x84   :  { %v23_v6 = vmul.f32 %v21_v3, %v15_v4  ;;  %v24_v7 = vmul.f32 %v21_v3, %v16_v5 }
  0x87   :  { %v29_v8 = vpop.permute.xlu0 %28 }
  0x88   :  { %v31_v9 = vadd.f32 %v29_v8, %v23_v6  ;;  %v32_v10 = vadd.f32 %v29_v8, %v24_v7 }
  0x8a   :  { %33 = vst [vmem:[#allocation2] sm:$0xff] %v31_v9  ;;  %34 = vst [vmem:[#allocation2 + $0x8] sm:$0xff] %v32_v10 }
  0x8b   :  { %63 = shalt.err (!%p60_p4)
}
  0x8c   :  { %s64_s2 = scalar_lea.hbm %s125_s3, 256 }
  0x8d   :  { %p65_p5 = scmp.ne.s32.totalorder %s125_s3, %s64_s2  ;;  %p68_p6 = scmp.lt.u32.totalorder %s64_s2, %s125_s3 }
  0x8f   :  { %p70_p7 = pnand %p68_p6, %p65_p5 }
  0x91   :  { %73 = shalt.err (!%p70_p7)
}
  0x92   :  { %44 = dma.vmem_to_hbm [thread:$0]  %s42_s0, 256, %s125_s3, [#allocation3]  }
  0x93   :  { %74 = dma.done.wait [#allocation3], 256  }
  0x94   :  { %75 = vsyncadd [#allocation3], 4294967040 }
  0x95   :  { %48 = vsyncpa [#allocation3], 1 }

</bundles_post_ra>
